<compile_context>
chip_gen: v7x
topology: tpu7x:2x2x1
jax: 0.10.0
libtpu: 0.0.40
codegen_flags: <defaults>
</compile_context>

<pallas_src>
import jax
import jax.numpy as jnp
from jax.experimental import pallas as pl
from jax.experimental.pallas import tpu as pltpu

B = 8                 # batch
DIM = 128             # conf.dim
HID = 128             # Judge hidden size
GRAPH_NUM = 64        # conf.graph_num
EDGE_TYPE_NUM = 16    # conf.edge_type_num
EPISODE_LEN = 4       # conf.episode_len
MAX_NORM = 0.1        # torch.nn.Embedding(max_norm=0.1)
LANES = 128           # lane-dense output width


def model_kernel(per_ex_ref, rowvecs_ref, emb_ref, w1_ref, out_ref):
    # ---- max_norm renormalisation of the node-embedding table --------------
    # (PyTorch renorms only looked-up rows in place with a norm+1e-7
    #  denominator; scaling a copy of the whole table before the one-hot
    #  gather yields identical forward values for the gathered rows.)
    emb = emb_ref[...]                                          # (GRAPH_NUM, DIM)
    norm = jnp.sqrt(jnp.sum(emb * emb, axis=-1, keepdims=True))  # (GRAPH_NUM, 1)
    scale = jnp.minimum(1.0, MAX_NORM / (norm + 1e-7))
    emb_n = emb * scale                                          # (GRAPH_NUM, DIM)

    # ---- fused one-hot gather: start rows 0:B, end rows B:2B, ONE MXU dot ---
    ids = per_ex_ref[:, 0:1].astype(jnp.int32)                   # (2B, 1)
    iota = jax.lax.broadcasted_iota(jnp.int32, (2 * B, GRAPH_NUM), 1)
    onehot = (ids == iota).astype(jnp.float32)                   # (2B, GRAPH_NUM)
    se = jnp.dot(onehot, emb_n, preferred_element_type=jnp.float32)  # (2B, DIM)
    start_e = se[0:B, :]                                         # (B, DIM)
    end_e = se[B:2 * B, :]                                       # (B, DIM)

    # TODO(synk): the MultiAgents graph-walk rollout depends on graph files
    # (graph_map.json / node2id.json) and a data-dependent environment step;
    # it is replaced by a deterministic surrogate (history folded into the
    # precomputed bias row, relevance = <start, end>).
    relevance = jnp.sum(start_e * end_e, axis=-1, keepdims=True)  # (B, 1)

    # ---- Judge head: single K=256 bf16 MXU dot against stacked folded W1 ----
    # h = start@(0.5*w1a+w1b) + end@(0.5*w1a+w1c) + [hist@(w1a+w1d) + b1]
    h_in = jnp.concatenate([start_e, end_e], axis=1).astype(jnp.bfloat16)  # (B, 2*DIM)
    bias = rowvecs_ref[0:1, :]                                   # (1, HID) fused bias
    h = jnp.dot(h_in, w1_ref[...], preferred_element_type=jnp.float32) + bias
    h = jnp.maximum(h, 0.0)                                      # (B, HID)

    # N=1 output layer on the VPU: row-wise dot against w2 (1, HID).
    w2_row = rowvecs_ref[1:2, :]                                 # (1, HID)
    b2 = rowvecs_ref[2:3, 0:1]                                   # (1, 1)
    logit = (jnp.sum(h * w2_row, axis=-1, keepdims=True)
             + b2 + relevance)                                   # (B, 1)

    # ---- BCE-with-logits, mean over batch -----------------------------------
    y = per_ex_ref[0:B, 1:2]                                     # (B, 1)
    per_ex = (jnp.maximum(logit, 0.0) - logit * y
              + jnp.log(1.0 + jnp.exp(-jnp.abs(logit))))         # stable softplus form
    loss = jnp.sum(per_ex, axis=0, keepdims=True) * (1.0 / B)    # (1, 1)

    # ---- single lane-dense output tile: lane 0 = logit, lane 1 = loss -------
    lane = jax.lax.broadcasted_iota(jnp.int32, (B, LANES), 1)
    out_ref[...] = jnp.where(lane == 1,
                             jnp.broadcast_to(loss, (B, LANES)),
                             jnp.broadcast_to(logit, (B, LANES)))


def model_forward(start_ids, end_ids, labels, params):
    emb, edge, w1, b1, w2, b2 = params

    # Fold W1 once (surrogate out_embs = 0.5*(start+end)+hist) and stack the
    # start/end blocks for one K=256 dot; bf16 weights, f32 accumulation.
    w1a = w1[0 * DIM:1 * DIM, :]
    w1b = w1[1 * DIM:2 * DIM, :]
    w1c = w1[2 * DIM:3 * DIM, :]
    w1d = w1[3 * DIM:4 * DIM, :]
    w1_start = 0.5 * w1a + w1b                       # (DIM, HID)
    w1_end = 0.5 * w1a + w1c                         # (DIM, HID)
    w1_hist = w1a + w1d                              # (DIM, HID)
    w1_cat = jnp.concatenate([w1_start, w1_end], axis=0).astype(jnp.bfloat16)  # (2*DIM, HID)

    # Batch-independent history path precomputed here (surrogate mean over
    # the first EPISODE_LEN edge-type embeddings) and folded with b1.
    edge_hist = jnp.mean(edge[0:EPISODE_LEN, :], axis=0, keepdims=True)  # (1, DIM)
    fused_bias = edge_hist @ w1_hist + b1                                 # (1, HID)

    # Pack tiny per-example operands into one (16, 128) tile:
    #   column 0 rows 0:B = start ids, rows B:2B = end ids; column 1 rows 0:B = labels.
    per_ex = jnp.zeros((2 * B, LANES), jnp.float32)
    per_ex = per_ex.at[0:B, 0].set(start_ids.astype(jnp.float32))
    per_ex = per_ex.at[B:2 * B, 0].set(end_ids.astype(jnp.float32))
    per_ex = per_ex.at[0:B, 1].set(labels.reshape(B))

    # Pack batch-independent row vectors into one (8, 128) tile:
    #   row 0 = fused bias, row 1 = w2^T, [2, 0] = b2.
    rowvecs = jnp.zeros((8, LANES), jnp.float32)
    rowvecs = rowvecs.at[0, :].set(fused_bias.reshape(HID))
    rowvecs = rowvecs.at[1, :].set(w2.reshape(HID))
    rowvecs = rowvecs.at[2, 0].set(b2.reshape(()))

    vmem = pl.BlockSpec(memory_space=pltpu.MemorySpace.VMEM)
    cost = pl.CostEstimate(
        flops=2 * (2 * B * GRAPH_NUM * DIM + B * (2 * DIM) * HID) + 4 * B * HID,
        transcendentals=GRAPH_NUM + 2 * B,
        bytes_accessed=((per_ex.size + rowvecs.size + emb.size + B * LANES) * 4
                        + w1_cat.size * 2),
    )
    out = pl.pallas_call(
        model_kernel,
        out_shape=jax.ShapeDtypeStruct((B, LANES), jnp.float32),
        in_specs=[vmem, vmem, vmem, vmem],
        out_specs=vmem,
        cost_estimate=cost,
    )(per_ex, rowvecs, emb, w1_cat)

    return out[:, 0:1], out[0, 1]


if __name__ == "__main__":
    key = jax.random.PRNGKey(0)
    k_emb, k_edge, k_w1, k_w2, k_s, k_e, k_y = jax.random.split(key, 7)

    # Deterministic parameter init (synthetic; no checkpoint / graph files).
    emb = jax.random.normal(k_emb, (GRAPH_NUM, DIM), jnp.float32) * 0.05
    edge = jax.random.normal(k_edge, (EDGE_TYPE_NUM, DIM), jnp.float32) * 0.05
    w1 = jax.random.normal(k_w1, (4 * DIM, HID), jnp.float32) * 0.05
    b1 = jnp.zeros((1, HID), jnp.float32)
    w2 = jax.random.normal(k_w2, (HID, 1), jnp.float32) * 0.05
    b2 = jnp.zeros((1, 1), jnp.float32)
    params = (emb, edge, w1, b1, w2, b2)

    # Batch inputs (indices into the node-embedding table + binary labels).
    batch_start_inds = jax.random.randint(k_s, (B,), 0, GRAPH_NUM, jnp.int32)
    batch_end_inds = jax.random.randint(k_e, (B,), 0, GRAPH_NUM, jnp.int32)
    batch_label = jax.random.bernoulli(k_y, 0.5, (B, 1)).astype(jnp.float32)

    logit, loss = model_forward(batch_start_inds, batch_end_inds,
                                batch_label, params)
    jax.block_until_ready((logit, loss))
    print("KERNEL_OK")
</pallas_src>

<mosaic_0001>
module attributes {stable_mosaic.version = 11 : i64} {
  func.func @model_kernel(%arg0: memref<16x128xf32, #tpu.memory_space<vmem>>, %arg1: memref<8x128xf32, #tpu.memory_space<vmem>>, %arg2: memref<64x128xf32, #tpu.memory_space<vmem>>, %arg3: memref<256x128xbf16, #tpu.memory_space<vmem>>, %arg4: memref<8x128xf32, #tpu.memory_space<vmem>>) attributes {dimension_semantics = [], scalar_prefetch = 0 : i64, scratch_operands = 0 : i64, tpu.core_type = #tpu.core_type<tc>} {
    %c0 = arith.constant 0 : index
    %c0_0 = arith.constant 0 : index
    %0 = vector.load %arg2[%c0, %c0_0] : memref<64x128xf32, #tpu.memory_space<vmem>>, vector<64x128xf32>
    %1 = arith.mulf %0, %0 : vector<64x128xf32>
    %cst = arith.constant dense<0.000000e+00> : vector<64xf32>
    %2 = vector.multi_reduction <add>, %1, %cst [1] : vector<64x128xf32> to vector<64xf32>
    %3 = vector.shape_cast %2 : vector<64xf32> to vector<64x1xf32>
    %4 = math.sqrt %3 : vector<64x1xf32>
    %cst_1 = arith.constant 1.000000e-07 : f32
    %5 = vector.broadcast %cst_1 : f32 to vector<64x1xf32>
    %6 = arith.addf %4, %5 : vector<64x1xf32>
    %cst_2 = arith.constant 1.000000e-01 : f32
    %7 = vector.broadcast %cst_2 : f32 to vector<64x1xf32>
    %8 = arith.divf %7, %6 : vector<64x1xf32>
    %cst_3 = arith.constant 1.000000e+00 : f32
    %9 = vector.broadcast %cst_3 : f32 to vector<64x1xf32>
    %10 = arith.minimumf %9, %8 : vector<64x1xf32>
    %11 = vector.broadcast %10 : vector<64x1xf32> to vector<64x128xf32>
    %12 = arith.mulf %0, %11 : vector<64x128xf32>
    %c0_4 = arith.constant 0 : index
    %c0_5 = arith.constant 0 : index
    %13 = vector.load %arg0[%c0_4, %c0_5] : memref<16x128xf32, #tpu.memory_space<vmem>>, vector<16x1xf32>
    %14 = arith.fptosi %13 : vector<16x1xf32> to vector<16x1xi32>
    %15 = tpu.iota {dimensions = array<i32: 1>} : vector<16x64xi32>
    %16 = vector.broadcast %14 : vector<16x1xi32> to vector<16x64xi32>
    %17 = arith.cmpi eq, %16, %15 : vector<16x64xi32>
    %18 = arith.extui %17 : vector<16x64xi1> to vector<16x64xi32>
    %19 = arith.sitofp %18 : vector<16x64xi32> to vector<16x64xf32>
    %cst_6 = arith.constant dense<0.000000e+00> : vector<16x128xf32>
    %20 = tpu.matmul %19, %12, %cst_6 {dimension_numbers = #tpu.dot_dimension_numbers<[1], [0], [0], [1], [0, 0, 1, 1], [], []>} : vector<16x64xf32>, vector<64x128xf32>, vector<16x128xf32> -> vector<16x128xf32>
    %21 = vector.extract_strided_slice %20 {offsets = [0, 0], sizes = [8, 128], strides = [1, 1]} : vector<16x128xf32> to vector<8x128xf32>
    %22 = vector.extract_strided_slice %20 {offsets = [8, 0], sizes = [8, 128], strides = [1, 1]} : vector<16x128xf32> to vector<8x128xf32>
    %23 = arith.mulf %21, %22 : vector<8x128xf32>
    %cst_7 = arith.constant dense<0.000000e+00> : vector<8xf32>
    %24 = vector.multi_reduction <add>, %23, %cst_7 [1] : vector<8x128xf32> to vector<8xf32>
    %25 = vector.shape_cast %24 : vector<8xf32> to vector<8x1xf32>
    %26 = tpu.concatenate %21, %22 in 1 : vector<8x128xf32>, vector<8x128xf32> -> vector<8x256xf32>
    %27 = arith.truncf %26 : vector<8x256xf32> to vector<8x256xbf16>
    %c0_8 = arith.constant 0 : index
    %c0_9 = arith.constant 0 : index
    %28 = vector.load %arg1[%c0_8, %c0_9] : memref<8x128xf32, #tpu.memory_space<vmem>>, vector<1x128xf32>
    %c0_10 = arith.constant 0 : index
    %c0_11 = arith.constant 0 : index
    %29 = vector.load %arg3[%c0_10, %c0_11] : memref<256x128xbf16, #tpu.memory_space<vmem>>, vector<256x128xbf16>
    %cst_12 = arith.constant dense<0.000000e+00> : vector<8x128xf32>
    %30 = tpu.matmul %27, %29, %cst_12 {dimension_numbers = #tpu.dot_dimension_numbers<[1], [0], [0], [1], [0, 0, 1, 1], [], []>} : vector<8x256xbf16>, vector<256x128xbf16>, vector<8x128xf32> -> vector<8x128xf32>
    %31 = vector.broadcast %28 : vector<1x128xf32> to vector<8x128xf32>
    %32 = arith.addf %30, %31 : vector<8x128xf32>
    %cst_13 = arith.constant 0.000000e+00 : f32
    %33 = vector.broadcast %cst_13 : f32 to vector<8x128xf32>
    %34 = arith.maximumf %32, %33 : vector<8x128xf32>
    %c1 = arith.constant 1 : index
    %c0_14 = arith.constant 0 : index
    %35 = vector.load %arg1[%c1, %c0_14] : memref<8x128xf32, #tpu.memory_space<vmem>>, vector<1x128xf32>
    %c2 = arith.constant 2 : index
    %c0_15 = arith.constant 0 : index
    %36 = vector.load %arg1[%c2, %c0_15] : memref<8x128xf32, #tpu.memory_space<vmem>>, vector<1x1xf32>
    %37 = vector.broadcast %35 : vector<1x128xf32> to vector<8x128xf32>
    %38 = arith.mulf %34, %37 : vector<8x128xf32>
    %cst_16 = arith.constant dense<0.000000e+00> : vector<8xf32>
    %39 = vector.multi_reduction <add>, %38, %cst_16 [1] : vector<8x128xf32> to vector<8xf32>
    %40 = vector.shape_cast %39 : vector<8xf32> to vector<8x1xf32>
    %41 = vector.broadcast %36 : vector<1x1xf32> to vector<8x1xf32>
    %42 = arith.addf %40, %41 : vector<8x1xf32>
    %43 = arith.addf %42, %25 : vector<8x1xf32>
    %c0_17 = arith.constant 0 : index
    %c1_18 = arith.constant 1 : index
    %44 = vector.load %arg0[%c0_17, %c1_18] : memref<16x128xf32, #tpu.memory_space<vmem>>, vector<8x1xf32>
    %cst_19 = arith.constant 0.000000e+00 : f32
    %45 = vector.broadcast %cst_19 : f32 to vector<8x1xf32>
    %46 = arith.maximumf %43, %45 : vector<8x1xf32>
    %47 = arith.mulf %43, %44 : vector<8x1xf32>
    %48 = arith.subf %46, %47 : vector<8x1xf32>
    %49 = math.absf %43 : vector<8x1xf32>
    %cst_20 = arith.constant 0.000000e+00 : f32
    %50 = vector.broadcast %cst_20 : f32 to vector<8x1xf32>
    %51 = arith.subf %50, %49 : vector<8x1xf32>
    %52 = math.exp %51 : vector<8x1xf32>
    %cst_21 = arith.constant 1.000000e+00 : f32
    %53 = vector.broadcast %cst_21 : f32 to vector<8x1xf32>
    %54 = arith.addf %53, %52 : vector<8x1xf32>
    %55 = math.log %54 : vector<8x1xf32>
    %56 = arith.addf %48, %55 : vector<8x1xf32>
    %cst_22 = arith.constant dense<0.000000e+00> : vector<1xf32>
    %57 = vector.multi_reduction <add>, %56, %cst_22 [0] : vector<8x1xf32> to vector<1xf32>
    %58 = vector.shape_cast %57 : vector<1xf32> to vector<1x1xf32>
    %cst_23 = arith.constant 1.250000e-01 : f32
    %59 = vector.broadcast %cst_23 : f32 to vector<1x1xf32>
    %60 = arith.mulf %58, %59 : vector<1x1xf32>
    %61 = tpu.iota {dimensions = array<i32: 1>} : vector<8x128xi32>
    %c1_i32 = arith.constant 1 : i32
    %62 = vector.broadcast %c1_i32 : i32 to vector<8x128xi32>
    %63 = arith.cmpi eq, %61, %62 : vector<8x128xi32>
    %64 = vector.shape_cast %60 : vector<1x1xf32> to vector<1x1xf32>
    %65 = vector.broadcast %64 : vector<1x1xf32> to vector<8x128xf32>
    %66 = vector.shape_cast %43 : vector<8x1xf32> to vector<8x1xf32>
    %67 = vector.broadcast %66 : vector<8x1xf32> to vector<8x128xf32>
    %68 = arith.select %63, %65, %67 : vector<8x128xi1>, vector<8x128xf32>
    %c0_24 = arith.constant 0 : index
    %c0_25 = arith.constant 0 : index
    %69 = vector.load %arg4[%c0_24, %c0_25] : memref<8x128xf32, #tpu.memory_space<vmem>>, vector<8x128xf32>
    tpu.vector_store %arg4[%c0_24, %c0_25], %68 {strides = array<i32>} : memref<8x128xf32, #tpu.memory_space<vmem>>, vector<8x128xf32>,
    return
  }
}

</mosaic_0001>

<bundles_post_ra>
// kernel: tpu_custom_call.1
= control target key start
LH: loop header
LB: loop body
LE: loop exit
PB: predicated region body
PF: predicated region fallthrough
CT: control target
= control target key end

     0   :  { %9 = vsyncpa [#allocation3], 0  ;;  %s1029_s0 = inlined_call_operand.hbm [shape: f32[16,128], index: 0, kind: input, shape index: {}]   ;;  %s1030_s1 = inlined_call_operand.hbm [shape: f32[8,128], index: 1, kind: input, shape index: {}]   ;;  %s1031_s2 = inlined_call_operand.hbm [shape: f32[64,128], index: 2, kind: input, shape index: {}]   ;;  %s1032_s3 = inlined_call_operand.hbm [shape: bf16[256,128], index: 3, kind: input, shape index: {}]   ;;  %s1033_s4 = inlined_call_operand.hbm [shape: f32[8,128], index: 4, kind: output, shape index: {}]  }
   0x1   :  { %10 = vsyncpa [#allocation6], 0 }
   0x2   :  { %11 = vsyncpa [#allocation9], 0 }
   0x3   :  { %12 = vsyncpa [#allocation4], 0  ;;  %s827_s15 = smov [#allocation5]   ;;  %s828_s17 = smov [#allocation2]  }
   0x4   :  { %s31_s16 = sshll.u32 %s827_s15, 4  ;;  %s18_s18 = sshll.u32 %s828_s17, 4  ;;  %s32_s16 = int_to_ptr.vmem [resolvable:$true] %s31_s16  ;;  %s864_s18 = int_to_ptr.vmem [resolvable:$true] %s18_s18 }
   0x5   :  { %s709_s21 = scalar_lea.hbm %s1030_s1, 128 }
   0x6   :  { %p710_p0 = scmp.ne.s32.totalorder %s1030_s1, %s709_s21  ;;  %p713_p1 = scmp.lt.u32.totalorder %s709_s21, %s1030_s1 }
   0x8   :  { %p715_p2 = pnand %p713_p1, %p710_p0 }
   0xa   :  { %718 = shalt.err (!%p715_p2)
}
   0xb   :  { %s719_s26 = scalar_lea.vmem %s32_s16, 128  ;;  %p724_p4 = scmp.lt.s32.totalorder %s32_s16, %s32_s16 }
   0xc   :  { %p720_p3 = scmp.ne.s32.totalorder %s32_s16, %s719_s26  ;;  %p725_p5 = scmp.lt.s32.totalorder %s719_s26, %s719_s26 }
   0xe   :  { %p726_p6 = por %p725_p5, %p724_p4 }
  0x10   :  { %p727_p7 = pnand %p726_p6, %p720_p3 }
  0x12   :  { %730 = shalt.err (!%p727_p7)
}
  0x13   :  { %34 = dma.hbm_to_vmem [thread:$0]  %s1030_s1, 128, %s32_s16, [#allocation6]  }
  0x14   :  { %s731_s5 = scalar_lea.hbm %s1029_s0, 256 }
  0x15   :  { %p732_p8 = scmp.ne.s32.totalorder %s1029_s0, %s731_s5  ;;  %p735_p9 = scmp.lt.u32.totalorder %s731_s5, %s1029_s0 }
  0x17   :  { %p737_p10 = pnand %p735_p9, %p732_p8 }
  0x19   :  { %740 = shalt.err (!%p737_p10)
}
  0x1a   :  { %s741_s10 = scalar_lea.vmem %s864_s18, 256  ;;  %p746_p12 = scmp.lt.s32.totalorder %s864_s18, %s864_s18 }
  0x1b   :  { %p742_p11 = scmp.ne.s32.totalorder %s864_s18, %s741_s10  ;;  %p747_p13 = scmp.lt.s32.totalorder %s741_s10, %s741_s10 }
  0x1d   :  { %p748_p0 = por %p747_p13, %p746_p12 }
  0x1f   :  { %p749_p1 = pnand %p748_p0, %p742_p11 }
  0x21   :  { %752 = shalt.err (!%p749_p1)
}
  0x22   :  { %s829_s1 = smov 128   ;;  %s830_s11 = smov 8  }
  0x23   :  { %24 = dma.hbm_to_vmem [thread:$0]  %s1029_s0, 256, %s864_s18, [#allocation3], %s829_s1, %s829_s1, %s830_s11  }
  0x24   :  { %s831_s14 = smov [#allocation7]   ;;  %s832_s16 = smov [#allocation8]  }
  0x25   :  { %s40_s15 = sshll.u32 %s831_s14, 4  ;;  %s52_s17 = sshll.u32 %s832_s16, 4  ;;  %s41_s15 = int_to_ptr.vmem [resolvable:$true] %s40_s15  ;;  %s895_s17 = int_to_ptr.vmem [resolvable:$true] %s52_s17 }
  0x26   :  { %s753_s21 = scalar_lea.hbm %s1031_s2, 1024 }
  0x27   :  { %p754_p2 = scmp.ne.s32.totalorder %s1031_s2, %s753_s21  ;;  %p757_p3 = scmp.lt.u32.totalorder %s753_s21, %s1031_s2 }
  0x29   :  { %p759_p4 = pnand %p757_p3, %p754_p2 }
  0x2b   :  { %762 = shalt.err (!%p759_p4)
}
  0x2c   :  { %s763_s0 = scalar_lea.vmem %s41_s15, 1024  ;;  %p768_p6 = scmp.lt.s32.totalorder %s41_s15, %s41_s15 }
  0x2d   :  { %p764_p5 = scmp.ne.s32.totalorder %s41_s15, %s763_s0  ;;  %p769_p7 = scmp.lt.s32.totalorder %s763_s0, %s763_s0 }
  0x2f   :  { %p770_p8 = por %p769_p7, %p768_p6 }
  0x31   :  { %p771_p9 = pnand %p770_p8, %p764_p5 }
  0x33   :  { %774 = shalt.err (!%p771_p9)
}
  0x34   :  { %46 = dma.hbm_to_vmem [thread:$0]  %s1031_s2, 1024, %s41_s15, [#allocation6], %s829_s1, %s829_s1, %s830_s11  }
  0x35   :  { %s775_s29 = scalar_lea.hbm %s1032_s3, 2048 }
  0x36   :  { %p776_p10 = scmp.ne.s32.totalorder %s1032_s3, %s775_s29  ;;  %p779_p11 = scmp.lt.u32.totalorder %s775_s29, %s1032_s3 }
  0x38   :  { %p781_p12 = pnand %p779_p11, %p776_p10 }
  0x3a   :  { %784 = shalt.err (!%p781_p12)
}
  0x3b   :  { %s785_s8 = scalar_lea.vmem %s895_s17, 2048  ;;  %p790_p0 = scmp.lt.s32.totalorder %s895_s17, %s895_s17 }
  0x3c   :  { %p786_p13 = scmp.ne.s32.totalorder %s895_s17, %s785_s8  ;;  %p791_p1 = scmp.lt.s32.totalorder %s785_s8, %s785_s8 }
  0x3e   :  { %p792_p2 = por %p791_p1, %p790_p0 }
  0x40   :  { %p793_p3 = pnand %p792_p2, %p786_p13 }
  0x42   :  { %796 = shalt.err (!%p793_p3)
}
  0x43   :  { %s833_s2 = smov 64   ;;  %s834_s9 = smov 4  }
  0x44   :  { %58 = dma.hbm_to_vmem [thread:$0]  %s1032_s3, 2048, %s895_s17, [#allocation9], %s833_s2, %s833_s2, %s834_s9  }
  0x45   :  { %819 = dma.done.wait [#allocation3], 256  }
  0x46   :  { %820 = vsyncadd [#allocation3], 4294967040 }
  0x47   :  { %821 = dma.done.wait [#allocation6], 1152  }
  0x48   :  { %822 = vsyncadd [#allocation6], 4294966144 }
  0x49   :  { %823 = dma.done.wait [#allocation9], 2048  }
  0x4a   :  { %824 = vsyncadd [#allocation9], 4294965248  ;;  %v835_v0 = vmov 0   ;;  %v926_v1 = vld [vmem:[#allocation7 + $0x10] sm:$0xff]  ;;  %v928_v2 = vld [vmem:[#allocation7] sm:$0xff]  ;;  %v204_v41 = vlaneseq  ;;  %vm218_vm2 = vcmask 523264  }
  0x4b   :  { %655 = vset.pattern.permute.xlu0 %v835_v0  ;;  %656 = vset.pattern.permute.xlu1 %v835_v0  ;;  %v930_v3 = vld [vmem:[#allocation7 + $0x18] sm:$0xff]  ;;  %v82_v4 = vmul.f32 %v926_v1, %v926_v1  ;;  %v80_v5 = vmul.f32 %v928_v2, %v928_v2  ;;  %v936_v6 = vld [vmem:[#allocation7 + $0x8] sm:$0xff]  ;;  %v944_v10 = vld [vmem:[#allocation7 + $0x20] sm:$0xff]  ;;  %s837_s3 = smov 127   ;;  %s838_s11 = smov [#allocation10]  }
  0x4c   :  { %v938_v7 = vld [vmem:[#allocation7 + $0x28] sm:$0xff]  ;;  %v83_v8 = vmul.f32 %v930_v3, %v930_v3  ;;  %v81_v9 = vmul.f32 %v936_v6, %v936_v6  ;;  %v946_v11 = vld [vmem:[#allocation7 + $0x38] sm:$0xff]  ;;  %v948_v12 = vld [vmem:[#allocation7 + $0x30] sm:$0xff]  ;;  %v84_v14 = vmul.f32 %v944_v10, %v944_v10  ;;  %v967_v45 = vand.u32 127, %v204_v41  ;;  %s538_s12 = sshll.u32 %s838_s11, 4  ;;  %s539_s12 = int_to_ptr.vmem [resolvable:$true] %s538_s12 }
  0x4d   :  { %92 = vadd.xlane.f32.xlu1 %v82_v4  ;;  %88 = vadd.xlane.f32.xlu0 %v80_v5  ;;  %v85_v13 = vmul.f32 %v938_v7, %v938_v7  ;;  %v87_v15 = vmul.f32 %v946_v11, %v946_v11  ;;  %v86_v16 = vmul.f32 %v948_v12, %v948_v12  ;;  %v201_v17 = vld [vmem:[#allocation2 + $0x8] sm:$0xff]  ;;  %v958_v19 = vld [vmem:[#allocation2] sm:$0xff]  ;;  %v657_v23 = vld [vmem:[#allocation8 + $0x40] sm:$0xff]   ;;  %s797_s13 = scalar_lea.vmem %s539_s12, 128  ;;  %p802_p5 = scmp.lt.s32.totalorder %s539_s12, %s539_s12 }
  0x4e   :  { %v641_v18 = vtrunc.f32 %v201_v17  ;;  %v639_v21 = vtrunc.f32 %v958_v19  ;;  %v658_v24 = vld [vmem:[#allocation8] sm:$0xff]   ;;  %v659_v25 = vld [vmem:[#allocation8 + $0x48] sm:$0xff]   ;;  %582 = vmatprep.subr.bf16.mxu1 %v657_v23  ;;  %v661_v27 = vld [vmem:[#allocation8 + $0x50] sm:$0xff]   ;;  %p798_p4 = scmp.ne.s32.totalorder %s539_s12, %s797_s13  ;;  %p803_p6 = scmp.lt.s32.totalorder %s797_s13, %s797_s13 }
  0x4f   :  { %583 = vmatpush3.bf16.msra.mxu1 %v658_v24  ;;  %v660_v26 = vld [vmem:[#allocation8 + $0x8] sm:$0xff]   ;;  %v662_v28 = vld [vmem:[#allocation8 + $0x10] sm:$0xff]   ;;  %v663_v29 = vld [vmem:[#allocation8 + $0x58] sm:$0xff]   ;;  %v836_v24 = vmov 0.0  }
  0x50   :  { %v642_v20 = vcvt.f32.s32 %v641_v18  ;;  %v640_v22 = vcvt.f32.s32 %v639_v21  ;;  %584 = vmatprep.subr.bf16.mxu1 %v659_v25  ;;  %v664_v30 = vld [vmem:[#allocation8 + $0x18] sm:$0xff]   ;;  %v665_v31 = vld [vmem:[#allocation8 + $0x60] sm:$0xff]   ;;  %v667_v33 = vld [vmem:[#allocation8 + $0x68] sm:$0xff]   ;;  %p804_p7 = por %p803_p6, %p802_p5 }
  0x51   :  { %94 = vadd.xlane.f32.xlu1 %v83_v8  ;;  %90 = vadd.xlane.f32.xlu0 %v81_v9  ;;  %v666_v32 = vld [vmem:[#allocation8 + $0x20] sm:$0xff]   ;;  %v668_v34 = vld [vmem:[#allocation8 + $0x28] sm:$0xff]   ;;  %v669_v35 = vld [vmem:[#allocation8 + $0x70] sm:$0xff]  }
  0x52   :  { %v670_v36 = vld [vmem:[#allocation8 + $0x30] sm:$0xff]   ;;  %p805_p8 = pnand %p804_p7, %p798_p4 }
  0x53   :  { %585 = vmatpush3.bf16.msra.mxu1 %v660_v26 }
  0x54   :  { %586 = vmatprep.subr.bf16.mxu1 %v661_v27 }
  0x55   :  { %98 = vadd.xlane.f32.xlu1 %v85_v13  ;;  %96 = vadd.xlane.f32.xlu0 %v84_v14 }
  0x57   :  { %587 = vmatpush3.bf16.msra.mxu1 %v662_v28 }
  0x58   :  { %588 = vmatprep.subr.bf16.mxu1 %v663_v29 }
  0x59   :  { %102 = vadd.xlane.f32.xlu1 %v87_v15  ;;  %100 = vadd.xlane.f32.xlu0 %v86_v16 }
  0x5b   :  { %589 = vmatpush3.bf16.msra.mxu1 %v664_v30 }
  0x5c   :  { %590 = vmatprep.subr.bf16.mxu1 %v665_v31 }
  0x5f   :  { %591 = vmatpush3.bf16.msra.mxu1 %v666_v32 }
  0x60   :  { %592 = vmatprep.subr.bf16.mxu1 %v667_v33 }
  0x63   :  { %593 = vmatpush3.bf16.msra.mxu1 %v668_v34 }
  0x64   :  { %594 = vmatprep.subr.bf16.mxu1 %v669_v35 }
  0x67   :  { %595 = vmatpush3.bf16.msra.mxu1 %v670_v36 }
  0x6a   :  { %210 = vperm.xlu1 %656, %v642_v20  }
  0x6f   :  { %207 = vperm.xlu0 %655, %v640_v22  }
  0xda   :  { %v93_v37 = vpop.xlane.xlu1 %92  ;;  %v89_v38 = vpop.xlane.xlu0 %88 }
  0xdb   :  { %673 = vrsqrt.f32 %v93_v37  ;;  %vm120_vm0 = vcmp.eq.f32.partialorder %v93_v37, inf  ;;  %vm122_vm1 = vcmp.eq.f32.partialorder %v93_v37, 0.0  ;;  %v123_v50 = vand.u32 2147483648, %v93_v37 }
  0xdc   :  { %675 = vrsqrt.f32 %v89_v38  ;;  %vm106_vm3 = vcmp.eq.f32.partialorder %v89_v38, inf  ;;  %v109_v53 = vand.u32 2147483648, %v89_v38  ;;  %vm108_vm4 = vcmp.eq.f32.partialorder %v89_v38, 0.0 }
  0xde   :  { %v95_v39 = vpop.xlane.xlu1 %94  ;;  %v91_v40 = vpop.xlane.xlu0 %90 }
  0xdf   :  { %677 = vrsqrt.f32 %v95_v39  ;;  %vm127_vm5 = vcmp.eq.f32.partialorder %v95_v39, inf  ;;  %vm129_vm6 = vcmp.eq.f32.partialorder %v95_v39, 0.0  ;;  %v130_v59 = vand.u32 2147483648, %v95_v39 }
  0xe0   :  { %679 = vrsqrt.f32 %v91_v40  ;;  %vm113_vm7 = vcmp.eq.f32.partialorder %v91_v40, inf  ;;  %v116_v63 = vand.u32 2147483648, %v91_v40  ;;  %vm115_vm9 = vcmp.eq.f32.partialorder %v91_v40, 0.0 }
  0xe2   :  { %v961_v42 = vpop.xlane.xlu1 %98  ;;  %v963_v43 = vpop.xlane.xlu0 %96 }
  0xe3   :  { %681 = vrsqrt.f32 %v961_v42  ;;  %vm141_vm8 = vcmp.eq.f32.partialorder %v961_v42, inf  ;;  %vm143_vm10 = vcmp.eq.f32.partialorder %v961_v42, 0.0  ;;  %v144_v15 = vand.u32 2147483648, %v961_v42 }
  0xe4   :  { %683 = vrsqrt.f32 %v963_v43  ;;  %vm134_vm11 = vcmp.eq.f32.partialorder %v963_v43, inf  ;;  %v137_v23 = vand.u32 2147483648, %v963_v43  ;;  %vm136_vm13 = vcmp.eq.f32.partialorder %v963_v43, 0.0 }
  0xe5   :  { %v674_v44 = vpop.eup %673 }
  0xe6   :  { %v676_v46 = vpop.eup %675  ;;  %v119_v47 = vmul.f32 %v674_v44, %v93_v37  ;;  %v969_v48 = vpop.xlane.xlu1 %102 }
  0xe7   :  { %v971_v49 = vpop.xlane.xlu0 %100  ;;  %v105_v51 = vmul.f32 %v676_v46, %v89_v38  ;;  %685 = vrsqrt.f32 %v969_v48  ;;  %vm155_vm14 = vcmp.eq.f32.partialorder %v969_v48, inf  ;;  %vm157_vm15 = vcmp.eq.f32.partialorder %v969_v48, 0.0 }
  0xe8   :  { %v121_v52 = vsel %vm120_vm0, %v93_v37, %v119_v47  ;;  %687 = vrsqrt.f32 %v971_v49  ;;  %v158_v33 = vand.u32 2147483648, %v969_v48  ;;  %vm148_vm0 = vcmp.eq.f32.partialorder %v971_v49, inf }
  0xe9   :  { %v678_v54 = vpop.eup %677  ;;  %v107_v55 = vsel %vm106_vm3, %v89_v38, %v105_v51  ;;  %v124_v56 = vsel %vm122_vm1, %v123_v50, %v121_v52  ;;  %v151_v37 = vand.u32 2147483648, %v971_v49  ;;  %vm150_vm1 = vcmp.eq.f32.partialorder %v971_v49, 0.0 }
  0xea   :  { %v680_v57 = vpop.eup %679  ;;  %v126_v58 = vmul.f32 %v678_v54, %v95_v39  ;;  %v110_v60 = vsel %vm108_vm4, %v109_v53, %v107_v55  ;;  %v162_v61 = vadd.f32 1e-07, %v124_v56  ;;  %vm519_vm4 = vcmp.eq.s32.totalorder %v967_v45, 1 }
  0xeb   :  { %v112_v62 = vmul.f32 %v680_v57, %v91_v40  ;;  %v160_v0 = vadd.f32 1e-07, %v110_v60 }
  0xec   :  { %v128_v4 = vsel %vm127_vm5, %v95_v39, %v126_v58  ;;  %689 = vrcp.f32 %v162_v61 }
  0xed   :  { %v682_v5 = vpop.eup %681  ;;  %v114_v8 = vsel %vm113_vm7, %v91_v40, %v112_v62  ;;  %691 = vrcp.f32 %v160_v0  ;;  %v131_v9 = vsel %vm129_vm6, %v130_v59, %v128_v4 }
  0xee   :  { %v684_v13 = vpop.eup %683  ;;  %v140_v14 = vmul.f32 %v682_v5, %v961_v42  ;;  %v117_v16 = vsel %vm115_vm9, %v116_v63, %v114_v8  ;;  %v163_v17 = vadd.f32 1e-07, %v131_v9  ;;  %v208_v18 = vpop.permute.xlu0 %207 }
  0xef   :  { %v133_v20 = vmul.f32 %v684_v13, %v963_v43  ;;  %v161_v21 = vadd.f32 1e-07, %v117_v16  ;;  %vm212_vm12 = vcmp.eq.s32.totalorder %v208_v18, %v967_v45 }
  0xf0   :  { %v142_v22 = vsel %vm141_vm8, %v961_v42, %v140_v14  ;;  %693 = vrcp.f32 %v163_v17  ;;  %v549_v25 = vsel %vm212_vm12, 1.0, %v836_v24 }
  0xf1   :  { %v686_v26 = vpop.eup %685  ;;  %v135_v27 = vsel %vm134_vm11, %v963_v43, %v133_v20  ;;  %695 = vrcp.f32 %v161_v21  ;;  %v145_v28 = vsel %vm143_vm10, %v144_v15, %v142_v22  ;;  %620 = vmatprep.mubr.msk.f32.mxu0 %vm218_vm2, %v549_v25  ;;  %v672_v22 = vld [vmem:[#allocation8 + $0x38] sm:$0xff]  }
  0xf2   :  { %v688_v29 = vpop.eup %687  ;;  %v154_v30 = vmul.f32 %v686_v26, %v969_v48  ;;  %v138_v31 = vsel %vm136_vm13, %v137_v23, %v135_v27  ;;  %v165_v32 = vadd.f32 1e-07, %v145_v28  ;;  %v553_v28 = vld [vmem:[#allocation5] ss:$0 sm:$0xff] }
  0xf3   :  { %v147_v34 = vmul.f32 %v688_v29, %v971_v49  ;;  %v164_v35 = vadd.f32 1e-07, %v138_v31 }
  0xf4   :  { %v156_v36 = vsel %vm155_vm14, %v969_v48, %v154_v30  ;;  %697 = vrcp.f32 %v165_v32 }
  0xf5   :  { %v149_v38 = vsel %vm148_vm0, %v971_v49, %v147_v34  ;;  %699 = vrcp.f32 %v164_v35  ;;  %v159_v39 = vsel %vm157_vm15, %v158_v33, %v156_v36  ;;  %v570_v33 = vld [vmem:[#allocation5 + $0x1] ss:$0 sm:$0xff]  ;;  %v571_v36 = vld [vmem:[#allocation5 + $0x2] ss:$0 sm:$0xff] }
  0xf6   :  { %v690_v40 = vpop.eup %689  ;;  %v152_v41 = vsel %vm150_vm1, %v151_v37, %v149_v38  ;;  %v167_v42 = vadd.f32 1e-07, %v159_v39 }
  0xf7   :  { %v692_v43 = vpop.eup %691  ;;  %v166_v44 = vadd.f32 1e-07, %v152_v41  ;;  %v173_v48 = vmul.f32 0.1, %v690_v40 }
  0xf8   :  { %v169_v46 = vmul.f32 0.1, %v692_v43  ;;  %701 = vrcp.f32 %v167_v42 }
  0xf9   :  { %703 = vrcp.f32 %v166_v44  ;;  %v186_v49 = vmin.f32 %v173_v48, 1.0 }
  0xfa   :  { %v694_v47 = vpop.eup %693  ;;  %v184_v53 = vmin.f32 %v169_v46, 1.0 }
  0xfb   :  { %v696_v50 = vpop.eup %695  ;;  %v175_v51 = vmul.f32 0.1, %v694_v47  ;;  %v194_v5 = vmul.f32 %v186_v49, %v926_v1  ;;  %v211_v1 = vpop.permute.xlu1 %210 }
  0xfc   :  { %v171_v52 = vmul.f32 0.1, %v696_v50  ;;  %v192_v59 = vmul.f32 %v184_v53, %v928_v2  ;;  %vm213_vm3 = vcmp.eq.s32.totalorder %v211_v1, %v967_v45 }
  0xfd   :  { %v187_v54 = vmin.f32 %v175_v51, 1.0 }
  0xfe   :  { %v698_v55 = vpop.eup %697  ;;  %v185_v56 = vmin.f32 %v171_v52, 1.0 }
  0xff   :  { %v700_v57 = vpop.eup %699  ;;  %v179_v58 = vmul.f32 0.1, %v698_v55  ;;  %v195_v61 = vmul.f32 %v187_v54, %v930_v3 }
 0x100   :  { %v193_v60 = vmul.f32 %v185_v56, %v936_v6  ;;  %v177_v62 = vmul.f32 0.1, %v700_v57 }
 0x101   :  { %v189_v63 = vmin.f32 %v179_v58, 1.0  ;;  %v627_v14 = vpack.c.bf16 %v195_v61, %v194_v5 }
 0x102   :  { %v702_v0 = vpop.eup %701  ;;  %v623_v4 = vpack.c.bf16 %v193_v60, %v192_v59  ;;  %v188_v8 = vmin.f32 %v177_v62, 1.0 }
 0x103   :  { %v704_v9 = vpop.eup %703  ;;  %v183_v13 = vmul.f32 0.1, %v702_v0  ;;  %v197_v16 = vmul.f32 %v189_v63, %v938_v7  ;;  %v550_v7 = vsel %vm213_vm3, 1.0, %v836_v24 }
 0x104   :  { %624 = vmatprep.subr.bf16.mxu0 %v623_v4  ;;  %v196_v15 = vmul.f32 %v188_v8, %v944_v10  ;;  %v181_v2 = vmul.f32 0.1, %v704_v9  ;;  %v671_v10 = vld [vmem:[#allocation8 + $0x78] sm:$0xff]  }
 0x105   :  { %626 = vmatpush3.bf16.msra.mxu0 %v623_v4  ;;  %v191_v6 = vmin.f32 %v183_v13, 1.0  ;;  %596 = vmatprep.subr.bf16.mxu1 %v671_v10 }
 0x106   :  { %628 = vmatprep.subr.bf16.mxu0 %v627_v14  ;;  %v190_v3 = vmin.f32 %v181_v2, 1.0  ;;  %v631_v17 = vpack.c.bf16 %v197_v16, %v196_v15  ;;  %597 = vmatpush3.bf16.msra.mxu1 %v672_v22 }
 0x107   :  { %v199_v20 = vmul.f32 %v191_v6, %v946_v11 }
 0x108   :  { %v198_v18 = vmul.f32 %v190_v3, %v948_v12 }
 0x109   :  { %630 = vmatpush3.bf16.msra.mxu0 %v627_v14 }
 0x10a   :  { %632 = vmatprep.subr.bf16.mxu0 %v631_v17  ;;  %v635_v21 = vpack.c.bf16 %v199_v20, %v198_v18 }
 0x10d   :  { %634 = vmatpush3.bf16.msra.mxu0 %v631_v17 }
 0x10e   :  { %636 = vmatprep.subr.bf16.mxu0 %v635_v21 }
 0x111   :  { %638 = vmatpush3.bf16.msra.mxu0 %v635_v21 }
 0x114   :  { %621 = vmatmul.mubr.msk.f32.vlgmr.msra.gmra.mrb[0].mxu0 %vm218_vm2, %v550_v7  ;;  %vm510_vm2 = vcmask 7168  }
 0x1e7   :  { %v622_v12 = vpop.f32.mrb[0].mxu0 }
 0x1e8   :  { %v291_v23 = vpop.f32.mrb[1].mxu0  ;;  %v304_v11 = vpack.c.bf16 %v622_v12, %v622_v12 }
 0x1e9   :  { %v300_v25 = vmul.f32 %v622_v12, %v291_v23  ;;  %v303_v26 = vpack.c.bf16 %v291_v23, %v291_v23 }
 0x1ea   :  { %470 = vmatprep.mubr.bf16.mxu1 %v304_v11 }
 0x1eb   :  { %471 = vmatmul.mubr.bf16.vlgmr.msra.gmra.mrb[0].mxu1 %v303_v26  ;;  %301 = vadd.xlane.f32.xlu0 %v300_v25 }
 0x278   :  { %v302_v39 = vpop.xlane.xlu0 %301 }
 0x2be   :  { %v598_v27 = vpop.f32.mrb[0].mxu1 }
 0x2bf   :  { %v599_v29 = vpop.f32.mrb[1].mxu1 }
 0x2c0   :  { %v600_v30 = vadd.f32 %v599_v29, %v598_v27  ;;  %v601_v24 = vpop.f32.mrb[2].mxu1 }
 0x2c1   :  { %v602_v31 = vpop.f32.mrb[3].mxu1 }
 0x2c2   :  { %v473_v32 = vadd.f32 %v600_v30, %v553_v28 }
 0x2c4   :  { %v478_v34 = vmax.f32 %v473_v32, 0.0 }
 0x2c6   :  { %v485_v35 = vmul.f32 %v570_v33, %v478_v34 }
 0x2c8   :  { %486 = vadd.xlane.f32.xlu1 %v485_v35 }
 0x2d9   :  { %497 = vrot.lane.b32.xlu1 %v958_v19, %s837_s3 }
 0x355   :  { %v487_v37 = vpop.xlane.xlu1 %486 }
 0x356   :  { %v492_v38 = vadd.f32 %v571_v36, %v487_v37 }
 0x358   :  { %v493_v40 = vadd.f32 %v492_v38, %v302_v39 }
 0x359   :  { %v498_v47 = vpop.permute.xlu1 %497 }
 0x35a   :  { %v502_v41 = vand.u32 2147483647, %v493_v40  ;;  %v495_v48 = vmax.f32 %v493_v40, 0.0  ;;  %v500_v50 = vmul.f32 %v498_v47, %v493_v40 }
 0x35c   :  { %v503_v42 = vsub.f32 0.0, %v502_v41  ;;  %v501_v52 = vsub.f32 %v495_v48, %v500_v50 }
 0x35e   :  { %v504_v43 = vmul.f32 1.442695, %v503_v42 }
 0x360   :  { %705 = vpow2.f32 %v504_v43 }
 0x36a   :  { %v706_v44 = vpop.eup %705 }
 0x36b   :  { %v506_v46 = vadd.f32 1.0, %v706_v44 }
 0x36d   :  { %707 = vlog2.f32 %v506_v46 }
 0x377   :  { %v708_v51 = vpop.eup %707 }
 0x378   :  { %v508_v53 = vmul.f32 0.6931472, %v708_v51 }
 0x37a   :  { %v509_v19 = vadd.f32 %v508_v53, %v501_v52 }
 0x37c   :  { %v511_v54 = vsel %vm510_vm2, %v509_v19, 0.0 }
 0x37d   :  { %v512_v55 = vrot.slane %v511_v54, 4 }
 0x37f   :  { %v513_v56 = vadd.f32 %v512_v55, %v511_v54 }
 0x381   :  { %v514_v49 = vrot.slane %v513_v56, 2 }
 0x383   :  { %v515_v57 = vadd.f32 %v514_v49, %v513_v56 }
 0x385   :  { %v516_v58 = vrot.slane %v515_v57, 1 }
 0x387   :  { %v517_v59 = vadd.f32 %v516_v58, %v515_v57 }
 0x389   :  { %v518_v60 = vmul.f32 0.125, %v517_v59 }
 0x38b   :  { %522 = vperm.xlu1 %656, %v518_v60  }
 0x38f   :  { %527 = vperm.xlu1 %656, %v493_v40  }
 0x40a   :  { %v523_v61 = vpop.permute.xlu1 %522 }
 0x40e   :  { %v528_v62 = vpop.permute.xlu1 %527 }
 0x40f   :  { %v530_v63 = vsel %vm519_vm4, %v523_v61, %v528_v62 }
 0x410   :  { %531 = vst [vmem:[#allocation10] sm:$0xff] %v530_v63 }
 0x411   :  { %808 = shalt.err (!%p805_p8)
}
 0x412   :  { %s809_s16 = scalar_lea.hbm %s1033_s4, 128 }
 0x413   :  { %p810_p9 = scmp.ne.s32.totalorder %s1033_s4, %s809_s16  ;;  %p813_p10 = scmp.lt.u32.totalorder %s809_s16, %s1033_s4 }
 0x415   :  { %p815_p11 = pnand %p813_p10, %p810_p9 }
 0x417   :  { %818 = shalt.err (!%p815_p11)
}
 0x418   :  { %541 = dma.vmem_to_hbm [thread:$0]  %s539_s12, 128, %s1033_s4, [#allocation4]  }
 0x419   :  { %825 = dma.done.wait [#allocation4], 128  }
 0x41a   :  { %826 = vsyncadd [#allocation4], 4294967168 }
 0x41b   :  { %545 = vsyncpa [#allocation3], 1 }
 0x41c   :  { %546 = vsyncpa [#allocation6], 1 }
 0x41d   :  { %547 = vsyncpa [#allocation9], 1 }
 0x41e   :  { %548 = vsyncpa [#allocation4], 1 }

</bundles_post_ra>
